<compile_context>
chip_gen: v6e
topology: v6e:2x2x1
jax: 0.10.0
libtpu: 0.0.40
codegen_flags: <defaults>
</compile_context>

<pallas_src>
import functools
import math

import jax
import jax.numpy as jnp
import numpy as np
from jax import lax
from jax.experimental import pallas as pl
from jax.experimental.pallas import tpu as pltpu

NEG_SLOPE = 0.01  # nn.LeakyReLU default negative_slope


def _leaky(v):
    # LeakyReLU(v) == max(v, slope*v) for 0 < slope < 1.
    return jnp.maximum(v, NEG_SLOPE * v)


# ---------------------------------------------------------------------------
# Kernel
# ---------------------------------------------------------------------------
def _resblock_kernel(x_ref, wdw1_ref, wpw1_ref, wdw2_ref, wpw2_ref, out_ref,
                     xpad, upad, t1_scr, u_scr, t2_scr,
                     *, K, H, W, Cin, Cout, Wg, B):
    # Cin / Cout here are the lane-padded channel counts (W*C % 128 == 0).
    p = K // 2
    Hp = H + 2 * p
    WCin = W * Cin
    WCout = W * Cout
    ngroups = W // Wg
    gin, gout = Wg * Cin, Wg * Cout

    # Zero only the H-halo rows (full-lane-width stores).  The interior writes
    # never touch them, so they stay zero across the per-image loop.  Re-zeroed
    # every grid step so the batch axis can stay "parallel" (per-core scratch).
    xpad[0:p, :] = jnp.zeros((p, WCin), jnp.float32)
    xpad[Hp - p:Hp, :] = jnp.zeros((p, WCin), jnp.float32)
    upad[0:p, :] = jnp.zeros((p, WCout), jnp.float32)
    upad[Hp - p:Hp, :] = jnp.zeros((p, WCout), jnp.float32)

    # Depthwise tap weights: loaded ONCE per grid step (<= 2 vregs each).
    # Boundary-invalid columns are already zeroed on the XLA side.
    w1 = wdw1_ref[...]          # (K*K, WCin)
    w2 = wdw2_ref[...]          # (K*K, WCout)

    def dwconv(pad_ref, w_taps, WC, C):
        # K row-band loads; each kx shift is a lane roll (XLU slot) and the
        # roll wrap-around is neutralized by the zeroed tap-weight columns.
        acc = jnp.zeros((H, WC), jnp.float32)
        for ky in range(K):
            band = pad_ref[ky:ky + H, :]                    # one load per ky
            for kx in range(K):
                dx = kx - p
                if dx == 0:
                    tap = band
                else:
                    tap = pltpu.roll(band, (-dx * C) % WC, axis=1)
                acc = acc + tap * w_taps[ky * K + kx:ky * K + kx + 1, :]
        return acc

    def row_of(b):
        r = b * H
        return pl.multiple_of(r, 8) if H % 8 == 0 else r

    # --- Stage 1: depthwise KxK of x, per image, stacked into (B*H, WCin) ---
    def body1(b, carry):
        row = row_of(b)
        xpad[p:p + H, :] = x_ref[pl.ds(row, H), :]          # lane offset 0
        t1_scr[pl.ds(row, H), :] = dwconv(xpad, w1, WCin, Cin)
        return carry
    lax.fori_loop(0, B, body1, 0)

    # --- Stage 2: pointwise 1x1 (#1) as block-diag MXU matmuls (M = B*H) ---
    wpw1 = wpw1_ref[...]
    for g in range(ngroups):
        t1g = t1_scr[:, g * gin:(g + 1) * gin]
        ug = jnp.dot(t1g, wpw1, preferred_element_type=jnp.float32)
        u_scr[:, g * gout:(g + 1) * gout] = _leaky(ug)

    # --- Stage 3: depthwise KxK of u, per image ---
    def body2(b, carry):
        row = row_of(b)
        upad[p:p + H, :] = u_scr[pl.ds(row, H), :]
        t2_scr[pl.ds(row, H), :] = dwconv(upad, w2, WCout, Cout)
        return carry
    lax.fori_loop(0, B, body2, 0)

    # --- Stage 4: pointwise 1x1 (#2) + residual + LeakyReLU; aligned stores ---
    wpw2 = wpw2_ref[...]
    for g in range(ngroups):
        t2g = t2_scr[:, g * gout:(g + 1) * gout]
        vg = jnp.dot(t2g, wpw2, preferred_element_type=jnp.float32)
        xg = x_ref[:, g * gin:(g + 1) * gin]
        out_ref[:, g * gin:(g + 1) * gin] = _leaky(xg + vg).astype(out_ref.dtype)


# ---------------------------------------------------------------------------
# Wrapper: layout + weight preprocessing (XLA side, once per call)
# ---------------------------------------------------------------------------
def _pad_channels(a, c_target):
    c = a.shape[-1]
    a = a.astype(jnp.float32)
    if c == c_target:
        return a
    pad = [(0, 0)] * (a.ndim - 1) + [(0, c_target - c)]
    return jnp.pad(a, pad)


def _prep_dw_weight(wdw, c_p, W):
    """Tiled (K*K, W*c_p) per-tap depthwise weights with the roll-wraparound
    boundary mask folded into zeroed columns."""
    K = wdw.shape[0]
    p = K // 2
    w = _pad_channels(wdw, c_p)                              # (K, K, c_p)
    w = jnp.tile(w, (1, 1, W)).reshape(K * K, W * c_p)
    wcol = np.arange(W * c_p) // c_p                         # output w per lane
    mask = np.zeros((K * K, W * c_p), np.float32)
    for ky in range(K):
        for kx in range(K):
            dx = kx - p
            mask[ky * K + kx, :] = (wcol + dx >= 0) & (wcol + dx < W)
    return w * jnp.asarray(mask)


def _prep_pw_weight(wpw, ci_p, co_p, Wg):
    """Block-diagonal pointwise weight over one lane group of Wg positions."""
    w = jnp.zeros((ci_p, co_p), jnp.float32)
    w = w.at[:wpw.shape[0], :wpw.shape[1]].set(wpw.astype(jnp.float32))
    return jnp.kron(jnp.eye(Wg, dtype=jnp.float32), w)       # (Wg*ci_p, Wg*co_p)


def _pick_batch_block(N, H, wc_max, target_bytes=2 << 20):
    # in/out blocks (double-buffered) + 3 activation scratch slabs, roughly.
    per_img = H * wc_max * 4 * 6
    bmax = max(1, target_bytes // max(per_img, 1))
    best = 1
    for b in range(1, N + 1):
        if N % b == 0 and b <= bmax and (b * H) % 8 == 0:
            best = b
    if (best * H) % 8 != 0 and best != N:
        best = N       # full-array block is always a legal block shape
    return best


def resblock_sepconv(x_nchw, wdw1, wpw1, wdw2, wpw2):
    """ResBlockSepConv forward (dilate=1).

    x_nchw : [N, Cin, H, W]   (PyTorch layout at the boundary)
    wdw1   : [K, K, Cin]      depthwise weights of SepConv #1 (groups=Cin)
    wpw1   : [Cin, Cout]      pointwise 1x1 weights of SepConv #1
    wdw2   : [K, K, Cout]     depthwise weights of SepConv #2 (groups=Cout)
    wpw2   : [Cout, Cin]      pointwise 1x1 weights of SepConv #2
    """
    N, Cin, H, W = x_nchw.shape
    K = wdw1.shape[0]
    Cout = wpw1.shape[1]
    assert K % 2 == 1, "odd kernel size expected for 'same' padding"
    p = K // 2
    Hp = H + 2 * p

    # Pad channels so W*C is a multiple of 128 -> lane-dense everywhere.
    # Padded channels carry exact zeros end to end and are sliced away below.
    q = 128 // math.gcd(W, 128)
    Cin_p = -(-Cin // q) * q
    Cout_p = -(-Cout // q) * q

    # Lane-group width for the block-diagonal pointwise weights: smallest
    # divisor of W whose group is 128-lane aligned on both sides.  Keeps the
    # pointwise weight O(group^2) instead of O(W^2) (v7x VMEM).
    Wg = W
    for d in range(1, W + 1):
        if W % d == 0 and (d * Cin_p) % 128 == 0 and (d * Cout_p) % 128 == 0:
            Wg = d
            break

    # Batch-block the grid so each step is ~MiB-scale and the pointwise
    # matmul M dim is B*H instead of H.
    B = _pick_batch_block(N, H, W * max(Cin_p, Cout_p))

    # Layout plumbing: NCHW -> NHWC -> (N*H, W*Cin_p), W*C on the lane dim.
    x = jnp.transpose(x_nchw, (0, 2, 3, 1)).astype(jnp.float32)
    x = _pad_channels(x, Cin_p).reshape(N * H, W * Cin_p)

    wdw1_t = _prep_dw_weight(wdw1, Cin_p, W)                 # (K*K, W*Cin_p)
    wdw2_t = _prep_dw_weight(wdw2, Cout_p, W)                # (K*K, W*Cout_p)
    wpw1_b = _prep_pw_weight(wpw1, Cin_p, Cout_p, Wg)        # (Wg*Cin_p, Wg*Cout_p)
    wpw2_b = _prep_pw_weight(wpw2, Cout_p, Cin_p, Wg)        # (Wg*Cout_p, Wg*Cin_p)

    flops = int(N * H * W * (2 * K * K * (Cin_p + Cout_p) + 4 * Cin_p * Cout_p + 8))
    bytes_accessed = int(4 * (2 * x.size + wdw1_t.size + wdw2_t.size
                              + wpw1_b.size + wpw2_b.size))

    kern = functools.partial(_resblock_kernel, K=K, H=H, W=W,
                             Cin=Cin_p, Cout=Cout_p, Wg=Wg, B=B)
    out = pl.pallas_call(
        kern,
        out_shape=jax.ShapeDtypeStruct((N * H, W * Cin_p), jnp.float32),
        grid=(N // B,),
        in_specs=[
            pl.BlockSpec((B * H, W * Cin_p), lambda n: (n, 0)),
            pl.BlockSpec((K * K, W * Cin_p), lambda n: (0, 0)),
            pl.BlockSpec((Wg * Cin_p, Wg * Cout_p), lambda n: (0, 0)),
            pl.BlockSpec((K * K, W * Cout_p), lambda n: (0, 0)),
            pl.BlockSpec((Wg * Cout_p, Wg * Cin_p), lambda n: (0, 0)),
        ],
        out_specs=pl.BlockSpec((B * H, W * Cin_p), lambda n: (n, 0)),
        scratch_shapes=[
            pltpu.VMEM((Hp, W * Cin_p), jnp.float32),      # per-image H-padded x
            pltpu.VMEM((Hp, W * Cout_p), jnp.float32),     # per-image H-padded u
            pltpu.VMEM((B * H, W * Cin_p), jnp.float32),   # depthwise-1 results
            pltpu.VMEM((B * H, W * Cout_p), jnp.float32),  # pointwise-1 results
            pltpu.VMEM((B * H, W * Cout_p), jnp.float32),  # depthwise-2 results
        ],
        compiler_params=pltpu.CompilerParams(
            dimension_semantics=("parallel",)),
        cost_estimate=pl.CostEstimate(flops=flops, transcendentals=0,
                                      bytes_accessed=bytes_accessed),
    )(x, wdw1_t, wpw1_b, wdw2_t, wpw2_b)

    out = out.reshape(N, H, W, Cin_p)[..., :Cin]
    return jnp.transpose(out, (0, 3, 1, 2))


# ---------------------------------------------------------------------------
# Pure-JAX reference and deterministic parameter init
# ---------------------------------------------------------------------------
def _leaky_ref(v):
    return jnp.where(v > 0, v, NEG_SLOPE * v)


def resblock_reference(x_nchw, wdw1, wpw1, wdw2, wpw2):
    dn = ("NHWC", "HWIO", "NHWC")
    x = jnp.transpose(x_nchw, (0, 2, 3, 1)).astype(jnp.float32)

    def sep(z, wdw, wpw):
        K, C = wdw.shape[0], z.shape[-1]
        p = K // 2
        z = lax.conv_general_dilated(z, wdw[:, :, None, :], (1, 1),
                                     [(p, p), (p, p)], dimension_numbers=dn,
                                     feature_group_count=C)
        return lax.conv_general_dilated(z, wpw[None, None], (1, 1),
                                        [(0, 0), (0, 0)], dimension_numbers=dn)

    t = _leaky_ref(sep(x, wdw1, wpw1))
    y = _leaky_ref(x + sep(t, wdw2, wpw2))
    return jnp.transpose(y, (0, 3, 1, 2))


def _kaiming_uniform(key, shape, fan_out):
    # kaiming_uniform_(a=0, mode='fan_out', nonlinearity='relu'):
    #   bound = sqrt(2) * sqrt(3 / fan_out) = sqrt(6 / fan_out)
    bound = math.sqrt(6.0 / fan_out)
    return jax.random.uniform(key, shape, jnp.float32, -bound, bound)


def init_resblock_params(key, in_ch, f_ch, f_sz):
    # bias=False everywhere (if_bias=False in SepConv); the unused
    # ResBlockSepConv.identity buffer is omitted.
    K = f_sz
    k1, k2, k3, k4 = jax.random.split(key, 4)
    wdw1 = _kaiming_uniform(k1, (K, K, in_ch), fan_out=in_ch * K * K)
    wpw1 = _kaiming_uniform(k2, (in_ch, f_ch), fan_out=f_ch)
    wdw2 = _kaiming_uniform(k3, (K, K, f_ch), fan_out=f_ch * K * K)
    wpw2 = _kaiming_uniform(k4, (f_ch, in_ch), fan_out=in_ch)
    return wdw1, wpw1, wdw2, wpw2


if __name__ == "__main__":
    key = jax.random.PRNGKey(0)

    def run_case(case_key, N, in_ch, f_ch, f_sz, H, W):
        kx, kp = jax.random.split(case_key)
        x = jax.random.normal(kx, (N, in_ch, H, W), jnp.float32)   # NCHW input
        wdw1, wpw1, wdw2, wpw2 = init_resblock_params(kp, in_ch, f_ch, f_sz)
        out = jax.block_until_ready(resblock_sepconv(x, wdw1, wpw1, wdw2, wpw2))
        ref = resblock_reference(x, wdw1, wpw1, wdw2, wpw2)
        np.testing.assert_allclose(np.asarray(out), np.asarray(ref),
                                   rtol=1e-4, atol=1e-4)

    k1, k2, k3 = jax.random.split(key, 3)
    # Primary config: in_ch == f_ch == 8 (how ResBlockSepConv is instantiated
    # inside LIH.py's WLBlock) -> W*C = 128, fully lane-dense end to end.
    run_case(k1, N=2, in_ch=8, f_ch=8, f_sz=3, H=16, W=16)
    # Channel-padded config: Cin=4 is padded to 8 lanes-wise, K=5 halo/masks.
    run_case(k2, N=2, in_ch=4, f_ch=8, f_sz=5, H=16, W=16)
    # Wider image: W*C = 256 -> two 128-lane pointwise groups, multi-vreg rolls.
    run_case(k3, N=2, in_ch=8, f_ch=8, f_sz=3, H=16, W=32)
    print("KERNEL_OK")
</pallas_src>

<mosaic_0001>
module attributes {stable_mosaic.version = 11 : i64} {
  func.func @_resblock_kernel(%arg0: i32, %arg1: memref<32x128xf32, #tpu.memory_space<vmem>>, %arg2: memref<9x128xf32, #tpu.memory_space<vmem>>, %arg3: memref<128x128xf32, #tpu.memory_space<vmem>>, %arg4: memref<9x128xf32, #tpu.memory_space<vmem>>, %arg5: memref<128x128xf32, #tpu.memory_space<vmem>>, %arg6: memref<32x128xf32, #tpu.memory_space<vmem>>, %arg7: memref<18x128xf32, #tpu.memory_space<vmem>>, %arg8: memref<18x128xf32, #tpu.memory_space<vmem>>, %arg9: memref<32x128xf32, #tpu.memory_space<vmem>>, %arg10: memref<32x128xf32, #tpu.memory_space<vmem>>, %arg11: memref<32x128xf32, #tpu.memory_space<vmem>>) attributes {dimension_semantics = [#tpu.dimension_semantics<parallel>], iteration_bounds = array<i64: 1>, scalar_prefetch = 0 : i64, scratch_operands = 5 : i64, tpu.core_type = #tpu.core_type<tc>, window_params = [{transform_indices = @transform_0, window_bounds = array<i64: 32, 128>}, {pipeline_mode = #tpu.pipeline_mode<synchronous>, transform_indices = @transform_1, window_bounds = array<i64: 9, 128>}, {pipeline_mode = #tpu.pipeline_mode<synchronous>, transform_indices = @transform_2, window_bounds = array<i64: 128, 128>}, {pipeline_mode = #tpu.pipeline_mode<synchronous>, transform_indices = @transform_3, window_bounds = array<i64: 9, 128>}, {pipeline_mode = #tpu.pipeline_mode<synchronous>, transform_indices = @transform_4, window_bounds = array<i64: 128, 128>}, {transform_indices = @transform_5, window_bounds = array<i64: 32, 128>}]} {
    %cst = arith.constant 0.000000e+00 : f32
    %0 = vector.broadcast %cst : f32 to vector<1x128xf32>
    %c0 = arith.constant 0 : index
    %c0_0 = arith.constant 0 : index
    %1 = vector.load %arg7[%c0, %c0_0] : memref<18x128xf32, #tpu.memory_space<vmem>>, vector<1x128xf32>
    tpu.vector_store %arg7[%c0, %c0_0], %0 {strides = array<i32>} : memref<18x128xf32, #tpu.memory_space<vmem>>, vector<1x128xf32>,
    %cst_1 = arith.constant 0.000000e+00 : f32
    %2 = vector.broadcast %cst_1 : f32 to vector<1x128xf32>
    %c17 = arith.constant 17 : index
    %c0_2 = arith.constant 0 : index
    %3 = vector.load %arg7[%c17, %c0_2] : memref<18x128xf32, #tpu.memory_space<vmem>>, vector<1x128xf32>
    tpu.vector_store %arg7[%c17, %c0_2], %2 {strides = array<i32>} : memref<18x128xf32, #tpu.memory_space<vmem>>, vector<1x128xf32>,
    %cst_3 = arith.constant 0.000000e+00 : f32
    %4 = vector.broadcast %cst_3 : f32 to vector<1x128xf32>
    %c0_4 = arith.constant 0 : index
    %c0_5 = arith.constant 0 : index
    %5 = vector.load %arg8[%c0_4, %c0_5] : memref<18x128xf32, #tpu.memory_space<vmem>>, vector<1x128xf32>
    tpu.vector_store %arg8[%c0_4, %c0_5], %4 {strides = array<i32>} : memref<18x128xf32, #tpu.memory_space<vmem>>, vector<1x128xf32>,
    %cst_6 = arith.constant 0.000000e+00 : f32
    %6 = vector.broadcast %cst_6 : f32 to vector<1x128xf32>
    %c17_7 = arith.constant 17 : index
    %c0_8 = arith.constant 0 : index
    %7 = vector.load %arg8[%c17_7, %c0_8] : memref<18x128xf32, #tpu.memory_space<vmem>>, vector<1x128xf32>
    tpu.vector_store %arg8[%c17_7, %c0_8], %6 {strides = array<i32>} : memref<18x128xf32, #tpu.memory_space<vmem>>, vector<1x128xf32>,
    %c0_9 = arith.constant 0 : index
    %c0_10 = arith.constant 0 : index
    %8 = vector.load %arg2[%c0_9, %c0_10] : memref<9x128xf32, #tpu.memory_space<vmem>>, vector<9x128xf32>
    %c0_11 = arith.constant 0 : index
    %c0_12 = arith.constant 0 : index
    %9 = vector.load %arg4[%c0_11, %c0_12] : memref<9x128xf32, #tpu.memory_space<vmem>>, vector<9x128xf32>
    %c0_i32 = arith.constant 0 : i32
    %c2_i32 = arith.constant 2 : i32
    %10 = arith.addi %c0_i32, %c2_i32 : i32
    %c1_i32 = arith.constant 1 : i32
    scf.for %arg12 = %c0_i32 to %10 step %c1_i32  : i32 {
      %c16_i32 = arith.constant 16 : i32
      %28 = arith.muli %arg12, %c16_i32 : i32
      %29 = tpu.assume_multiple %28, 8 : i32
      %30 = arith.index_cast %29 : i32 to index
      %c0_36 = arith.constant 0 : index
      %31 = vector.load %arg1[%30, %c0_36] : memref<32x128xf32, #tpu.memory_space<vmem>>, vector<16x128xf32>
      %c1 = arith.constant 1 : index
      %c0_37 = arith.constant 0 : index
      %32 = vector.load %arg7[%c1, %c0_37] : memref<18x128xf32, #tpu.memory_space<vmem>>, vector<16x128xf32>
      tpu.vector_store %arg7[%c1, %c0_37], %31 {strides = array<i32>} : memref<18x128xf32, #tpu.memory_space<vmem>>, vector<16x128xf32>,
      %cst_38 = arith.constant 0.000000e+00 : f32
      %33 = vector.broadcast %cst_38 : f32 to vector<16x128xf32>
      %c0_39 = arith.constant 0 : index
      %c0_40 = arith.constant 0 : index
      %34 = vector.load %arg7[%c0_39, %c0_40] : memref<18x128xf32, #tpu.memory_space<vmem>>, vector<16x128xf32>
      %c8_i32 = arith.constant 8 : i32
      %35 = tpu.dynamic_rotate %34 by %c8_i32 dim 1 : vector<16x128xf32>, i32 -> vector<16x128xf32>
      %36 = vector.extract_strided_slice %8 {offsets = [0, 0], sizes = [1, 128], strides = [1, 1]} : vector<9x128xf32> to vector<1x128xf32>
      %37 = vector.broadcast %36 : vector<1x128xf32> to vector<16x128xf32>
      %38 = arith.mulf %35, %37 : vector<16x128xf32>
      %39 = arith.addf %33, %38 : vector<16x128xf32>
      %40 = vector.extract_strided_slice %8 {offsets = [1, 0], sizes = [1, 128], strides = [1, 1]} : vector<9x128xf32> to vector<1x128xf32>
      %41 = vector.broadcast %40 : vector<1x128xf32> to vector<16x128xf32>
      %42 = arith.mulf %34, %41 : vector<16x128xf32>
      %43 = arith.addf %39, %42 : vector<16x128xf32>
      %c120_i32 = arith.constant 120 : i32
      %44 = tpu.dynamic_rotate %34 by %c120_i32 dim 1 : vector<16x128xf32>, i32 -> vector<16x128xf32>
      %45 = vector.extract_strided_slice %8 {offsets = [2, 0], sizes = [1, 128], strides = [1, 1]} : vector<9x128xf32> to vector<1x128xf32>
      %46 = vector.broadcast %45 : vector<1x128xf32> to vector<16x128xf32>
      %47 = arith.mulf %44, %46 : vector<16x128xf32>
      %48 = arith.addf %43, %47 : vector<16x128xf32>
      %c1_41 = arith.constant 1 : index
      %c0_42 = arith.constant 0 : index
      %49 = vector.load %arg7[%c1_41, %c0_42] : memref<18x128xf32, #tpu.memory_space<vmem>>, vector<16x128xf32>
      %c8_i32_43 = arith.constant 8 : i32
      %50 = tpu.dynamic_rotate %49 by %c8_i32_43 dim 1 : vector<16x128xf32>, i32 -> vector<16x128xf32>
      %51 = vector.extract_strided_slice %8 {offsets = [3, 0], sizes = [1, 128], strides = [1, 1]} : vector<9x128xf32> to vector<1x128xf32>
      %52 = vector.broadcast %51 : vector<1x128xf32> to vector<16x128xf32>
      %53 = arith.mulf %50, %52 : vector<16x128xf32>
      %54 = arith.addf %48, %53 : vector<16x128xf32>
      %55 = vector.extract_strided_slice %8 {offsets = [4, 0], sizes = [1, 128], strides = [1, 1]} : vector<9x128xf32> to vector<1x128xf32>
      %56 = vector.broadcast %55 : vector<1x128xf32> to vector<16x128xf32>
      %57 = arith.mulf %49, %56 : vector<16x128xf32>
      %58 = arith.addf %54, %57 : vector<16x128xf32>
      %c120_i32_44 = arith.constant 120 : i32
      %59 = tpu.dynamic_rotate %49 by %c120_i32_44 dim 1 : vector<16x128xf32>, i32 -> vector<16x128xf32>
      %60 = vector.extract_strided_slice %8 {offsets = [5, 0], sizes = [1, 128], strides = [1, 1]} : vector<9x128xf32> to vector<1x128xf32>
      %61 = vector.broadcast %60 : vector<1x128xf32> to vector<16x128xf32>
      %62 = arith.mulf %59, %61 : vector<16x128xf32>
      %63 = arith.addf %58, %62 : vector<16x128xf32>
      %c2 = arith.constant 2 : index
      %c0_45 = arith.constant 0 : index
      %64 = vector.load %arg7[%c2, %c0_45] : memref<18x128xf32, #tpu.memory_space<vmem>>, vector<16x128xf32>
      %c8_i32_46 = arith.constant 8 : i32
      %65 = tpu.dynamic_rotate %64 by %c8_i32_46 dim 1 : vector<16x128xf32>, i32 -> vector<16x128xf32>
      %66 = vector.extract_strided_slice %8 {offsets = [6, 0], sizes = [1, 128], strides = [1, 1]} : vector<9x128xf32> to vector<1x128xf32>
      %67 = vector.broadcast %66 : vector<1x128xf32> to vector<16x128xf32>
      %68 = arith.mulf %65, %67 : vector<16x128xf32>
      %69 = arith.addf %63, %68 : vector<16x128xf32>
      %70 = vector.extract_strided_slice %8 {offsets = [7, 0], sizes = [1, 128], strides = [1, 1]} : vector<9x128xf32> to vector<1x128xf32>
      %71 = vector.broadcast %70 : vector<1x128xf32> to vector<16x128xf32>
      %72 = arith.mulf %64, %71 : vector<16x128xf32>
      %73 = arith.addf %69, %72 : vector<16x128xf32>
      %c120_i32_47 = arith.constant 120 : i32
      %74 = tpu.dynamic_rotate %64 by %c120_i32_47 dim 1 : vector<16x128xf32>, i32 -> vector<16x128xf32>
      %75 = vector.extract_strided_slice %8 {offsets = [8, 0], sizes = [1, 128], strides = [1, 1]} : vector<9x128xf32> to vector<1x128xf32>
      %76 = vector.broadcast %75 : vector<1x128xf32> to vector<16x128xf32>
      %77 = arith.mulf %74, %76 : vector<16x128xf32>
      %78 = arith.addf %73, %77 : vector<16x128xf32>
      %79 = arith.index_cast %29 : i32 to index
      %c0_48 = arith.constant 0 : index
      %80 = vector.load %arg9[%79, %c0_48] : memref<32x128xf32, #tpu.memory_space<vmem>>, vector<16x128xf32>
      tpu.vector_store %arg9[%79, %c0_48], %78 {strides = array<i32>} : memref<32x128xf32, #tpu.memory_space<vmem>>, vector<16x128xf32>,
    }
    %c2_i32_13 = arith.constant 2 : i32
    %c0_14 = arith.constant 0 : index
    %c0_15 = arith.constant 0 : index
    %11 = vector.load %arg3[%c0_14, %c0_15] : memref<128x128xf32, #tpu.memory_space<vmem>>, vector<128x128xf32>
    %c0_16 = arith.constant 0 : index
    %c0_17 = arith.constant 0 : index
    %12 = vector.load %arg9[%c0_16, %c0_17] : memref<32x128xf32, #tpu.memory_space<vmem>>, vector<32x128xf32>
    %cst_18 = arith.constant dense<0.000000e+00> : vector<32x128xf32>
    %13 = tpu.matmul %12, %11, %cst_18 {dimension_numbers = #tpu.dot_dimension_numbers<[1], [0], [0], [1], [0, 0, 1, 1], [], []>} : vector<32x128xf32>, vector<128x128xf32>, vector<32x128xf32> -> vector<32x128xf32>
    %cst_19 = arith.constant 0.00999999977 : f32
    %14 = vector.broadcast %cst_19 : f32 to vector<32x128xf32>
    %15 = arith.mulf %14, %13 : vector<32x128xf32>
    %16 = arith.maximumf %13, %15 : vector<32x128xf32>
    %c0_20 = arith.constant 0 : index
    %c0_21 = arith.constant 0 : index
    %17 = vector.load %arg10[%c0_20, %c0_21] : memref<32x128xf32, #tpu.memory_space<vmem>>, vector<32x128xf32>
    tpu.vector_store %arg10[%c0_20, %c0_21], %16 {strides = array<i32>} : memref<32x128xf32, #tpu.memory_space<vmem>>, vector<32x128xf32>,
    %c0_i32_22 = arith.constant 0 : i32
    %c2_i32_23 = arith.constant 2 : i32
    %18 = arith.addi %c0_i32_22, %c2_i32_23 : i32
    %c1_i32_24 = arith.constant 1 : i32
    scf.for %arg12 = %c0_i32_22 to %18 step %c1_i32_24  : i32 {
      %c16_i32 = arith.constant 16 : i32
      %28 = arith.muli %arg12, %c16_i32 : i32
      %29 = tpu.assume_multiple %28, 8 : i32
      %30 = arith.index_cast %29 : i32 to index
      %c0_36 = arith.constant 0 : index
      %31 = vector.load %arg10[%30, %c0_36] : memref<32x128xf32, #tpu.memory_space<vmem>>, vector<16x128xf32>
      %c1 = arith.constant 1 : index
      %c0_37 = arith.constant 0 : index
      %32 = vector.load %arg8[%c1, %c0_37] : memref<18x128xf32, #tpu.memory_space<vmem>>, vector<16x128xf32>
      tpu.vector_store %arg8[%c1, %c0_37], %31 {strides = array<i32>} : memref<18x128xf32, #tpu.memory_space<vmem>>, vector<16x128xf32>,
      %cst_38 = arith.constant 0.000000e+00 : f32
      %33 = vector.broadcast %cst_38 : f32 to vector<16x128xf32>
      %c0_39 = arith.constant 0 : index
      %c0_40 = arith.constant 0 : index
      %34 = vector.load %arg8[%c0_39, %c0_40] : memref<18x128xf32, #tpu.memory_space<vmem>>, vector<16x128xf32>
      %c8_i32 = arith.constant 8 : i32
      %35 = tpu.dynamic_rotate %34 by %c8_i32 dim 1 : vector<16x128xf32>, i32 -> vector<16x128xf32>
      %36 = vector.extract_strided_slice %9 {offsets = [0, 0], sizes = [1, 128], strides = [1, 1]} : vector<9x128xf32> to vector<1x128xf32>
      %37 = vector.broadcast %36 : vector<1x128xf32> to vector<16x128xf32>
      %38 = arith.mulf %35, %37 : vector<16x128xf32>
      %39 = arith.addf %33, %38 : vector<16x128xf32>
      %40 = vector.extract_strided_slice %9 {offsets = [1, 0], sizes = [1, 128], strides = [1, 1]} : vector<9x128xf32> to vector<1x128xf32>
      %41 = vector.broadcast %40 : vector<1x128xf32> to vector<16x128xf32>
      %42 = arith.mulf %34, %41 : vector<16x128xf32>
      %43 = arith.addf %39, %42 : vector<16x128xf32>
      %c120_i32 = arith.constant 120 : i32
      %44 = tpu.dynamic_rotate %34 by %c120_i32 dim 1 : vector<16x128xf32>, i32 -> vector<16x128xf32>
      %45 = vector.extract_strided_slice %9 {offsets = [2, 0], sizes = [1, 128], strides = [1, 1]} : vector<9x128xf32> to vector<1x128xf32>
      %46 = vector.broadcast %45 : vector<1x128xf32> to vector<16x128xf32>
      %47 = arith.mulf %44, %46 : vector<16x128xf32>
      %48 = arith.addf %43, %47 : vector<16x128xf32>
      %c1_41 = arith.constant 1 : index
      %c0_42 = arith.constant 0 : index
      %49 = vector.load %arg8[%c1_41, %c0_42] : memref<18x128xf32, #tpu.memory_space<vmem>>, vector<16x128xf32>
      %c8_i32_43 = arith.constant 8 : i32
      %50 = tpu.dynamic_rotate %49 by %c8_i32_43 dim 1 : vector<16x128xf32>, i32 -> vector<16x128xf32>
      %51 = vector.extract_strided_slice %9 {offsets = [3, 0], sizes = [1, 128], strides = [1, 1]} : vector<9x128xf32> to vector<1x128xf32>
      %52 = vector.broadcast %51 : vector<1x128xf32> to vector<16x128xf32>
      %53 = arith.mulf %50, %52 : vector<16x128xf32>
      %54 = arith.addf %48, %53 : vector<16x128xf32>
      %55 = vector.extract_strided_slice %9 {offsets = [4, 0], sizes = [1, 128], strides = [1, 1]} : vector<9x128xf32> to vector<1x128xf32>
      %56 = vector.broadcast %55 : vector<1x128xf32> to vector<16x128xf32>
      %57 = arith.mulf %49, %56 : vector<16x128xf32>
      %58 = arith.addf %54, %57 : vector<16x128xf32>
      %c120_i32_44 = arith.constant 120 : i32
      %59 = tpu.dynamic_rotate %49 by %c120_i32_44 dim 1 : vector<16x128xf32>, i32 -> vector<16x128xf32>
      %60 = vector.extract_strided_slice %9 {offsets = [5, 0], sizes = [1, 128], strides = [1, 1]} : vector<9x128xf32> to vector<1x128xf32>
      %61 = vector.broadcast %60 : vector<1x128xf32> to vector<16x128xf32>
      %62 = arith.mulf %59, %61 : vector<16x128xf32>
      %63 = arith.addf %58, %62 : vector<16x128xf32>
      %c2 = arith.constant 2 : index
      %c0_45 = arith.constant 0 : index
      %64 = vector.load %arg8[%c2, %c0_45] : memref<18x128xf32, #tpu.memory_space<vmem>>, vector<16x128xf32>
      %c8_i32_46 = arith.constant 8 : i32
      %65 = tpu.dynamic_rotate %64 by %c8_i32_46 dim 1 : vector<16x128xf32>, i32 -> vector<16x128xf32>
      %66 = vector.extract_strided_slice %9 {offsets = [6, 0], sizes = [1, 128], strides = [1, 1]} : vector<9x128xf32> to vector<1x128xf32>
      %67 = vector.broadcast %66 : vector<1x128xf32> to vector<16x128xf32>
      %68 = arith.mulf %65, %67 : vector<16x128xf32>
      %69 = arith.addf %63, %68 : vector<16x128xf32>
      %70 = vector.extract_strided_slice %9 {offsets = [7, 0], sizes = [1, 128], strides = [1, 1]} : vector<9x128xf32> to vector<1x128xf32>
      %71 = vector.broadcast %70 : vector<1x128xf32> to vector<16x128xf32>
      %72 = arith.mulf %64, %71 : vector<16x128xf32>
      %73 = arith.addf %69, %72 : vector<16x128xf32>
      %c120_i32_47 = arith.constant 120 : i32
      %74 = tpu.dynamic_rotate %64 by %c120_i32_47 dim 1 : vector<16x128xf32>, i32 -> vector<16x128xf32>
      %75 = vector.extract_strided_slice %9 {offsets = [8, 0], sizes = [1, 128], strides = [1, 1]} : vector<9x128xf32> to vector<1x128xf32>
      %76 = vector.broadcast %75 : vector<1x128xf32> to vector<16x128xf32>
      %77 = arith.mulf %74, %76 : vector<16x128xf32>
      %78 = arith.addf %73, %77 : vector<16x128xf32>
      %79 = arith.index_cast %29 : i32 to index
      %c0_48 = arith.constant 0 : index
      %80 = vector.load %arg11[%79, %c0_48] : memref<32x128xf32, #tpu.memory_space<vmem>>, vector<16x128xf32>
      tpu.vector_store %arg11[%79, %c0_48], %78 {strides = array<i32>} : memref<32x128xf32, #tpu.memory_space<vmem>>, vector<16x128xf32>,
    }
    %c2_i32_25 = arith.constant 2 : i32
    %c0_26 = arith.constant 0 : index
    %c0_27 = arith.constant 0 : index
    %19 = vector.load %arg5[%c0_26, %c0_27] : memref<128x128xf32, #tpu.memory_space<vmem>>, vector<128x128xf32>
    %c0_28 = arith.constant 0 : index
    %c0_29 = arith.constant 0 : index
    %20 = vector.load %arg11[%c0_28, %c0_29] : memref<32x128xf32, #tpu.memory_space<vmem>>, vector<32x128xf32>
    %cst_30 = arith.constant dense<0.000000e+00> : vector<32x128xf32>
    %21 = tpu.matmul %20, %19, %cst_30 {dimension_numbers = #tpu.dot_dimension_numbers<[1], [0], [0], [1], [0, 0, 1, 1], [], []>} : vector<32x128xf32>, vector<128x128xf32>, vector<32x128xf32> -> vector<32x128xf32>
    %c0_31 = arith.constant 0 : index
    %c0_32 = arith.constant 0 : index
    %22 = vector.load %arg1[%c0_31, %c0_32] : memref<32x128xf32, #tpu.memory_space<vmem>>, vector<32x128xf32>
    %23 = arith.addf %22, %21 : vector<32x128xf32>
    %cst_33 = arith.constant 0.00999999977 : f32
    %24 = vector.broadcast %cst_33 : f32 to vector<32x128xf32>
    %25 = arith.mulf %24, %23 : vector<32x128xf32>
    %26 = arith.maximumf %23, %25 : vector<32x128xf32>
    %c0_34 = arith.constant 0 : index
    %c0_35 = arith.constant 0 : index
    %27 = vector.load %arg6[%c0_34, %c0_35] : memref<32x128xf32, #tpu.memory_space<vmem>>, vector<32x128xf32>
    tpu.vector_store %arg6[%c0_34, %c0_35], %26 {strides = array<i32>} : memref<32x128xf32, #tpu.memory_space<vmem>>, vector<32x128xf32>,
    return
  }
  func.func @transform_0(%arg0: i32) -> (i32, i32) {
    %c0_i32 = arith.constant 0 : i32
    %c0_i32_0 = arith.constant 0 : i32
    return %arg0, %c0_i32 : i32, i32
  }
  func.func @transform_1(%arg0: i32) -> (i32, i32) {
    %c0_i32 = arith.constant 0 : i32
    %c0_i32_0 = arith.constant 0 : i32
    %c0_i32_1 = arith.constant 0 : i32
    return %c0_i32, %c0_i32_0 : i32, i32
  }
  func.func @transform_2(%arg0: i32) -> (i32, i32) {
    %c0_i32 = arith.constant 0 : i32
    %c0_i32_0 = arith.constant 0 : i32
    %c0_i32_1 = arith.constant 0 : i32
    return %c0_i32, %c0_i32_0 : i32, i32
  }
  func.func @transform_3(%arg0: i32) -> (i32, i32) {
    %c0_i32 = arith.constant 0 : i32
    %c0_i32_0 = arith.constant 0 : i32
    %c0_i32_1 = arith.constant 0 : i32
    return %c0_i32, %c0_i32_0 : i32, i32
  }
  func.func @transform_4(%arg0: i32) -> (i32, i32) {
    %c0_i32 = arith.constant 0 : i32
    %c0_i32_0 = arith.constant 0 : i32
    %c0_i32_1 = arith.constant 0 : i32
    return %c0_i32, %c0_i32_0 : i32, i32
  }
  func.func @transform_5(%arg0: i32) -> (i32, i32) {
    %c0_i32 = arith.constant 0 : i32
    %c0_i32_0 = arith.constant 0 : i32
    return %arg0, %c0_i32 : i32, i32
  }
}

</mosaic_0001>

<bundles_post_ra>
// kernel: tpu_custom_call.1
= control target key start
LH: loop header
LB: loop body
LE: loop exit
PB: predicated region body
PF: predicated region fallthrough
CT: control target
= control target key end

     0   :  { %10 = vsyncpa [#allocation8], 0  ;;  %s1078_s0 = inlined_call_operand.hbm [shape: f32[32,128], index: 0, kind: input, shape index: {}]   ;;  %s1079_s1 = inlined_call_operand.hbm [shape: f32[9,128], index: 1, kind: input, shape index: {}]   ;;  %s1080_s2 = inlined_call_operand.hbm [shape: f32[128,128], index: 2, kind: input, shape index: {}]   ;;  %s1081_s3 = inlined_call_operand.hbm [shape: f32[9,128], index: 3, kind: input, shape index: {}]   ;;  %s1082_s4 = inlined_call_operand.hbm [shape: f32[128,128], index: 4, kind: input, shape index: {}]   ;;  %s1083_s5 = inlined_call_operand.hbm [shape: f32[32,128], index: 5, kind: output, shape index: {}]  }
   0x1   :  { %11 = vsyncpa [#allocation11], 0 }
   0x2   :  { %12 = vsyncpa [#allocation14], 0 }
   0x3   :  { %13 = vsyncpa [#allocation9], 0  ;;  %s903_s18 = smov [#allocation10]   ;;  %s904_s20 = smov [#allocation13]  }
   0x4   :  { %s31_s19 = sshll.u32 %s903_s18, 4  ;;  %s55_s21 = sshll.u32 %s904_s20, 4  ;;  %s32_s19 = int_to_ptr.vmem [resolvable:$true] %s31_s19  ;;  %s56_s21 = int_to_ptr.vmem [resolvable:$true] %s55_s21 }
   0x5   :  { %s767_s22 = scalar_lea.vmem %s32_s19, 256  ;;  %p772_p1 = scmp.lt.s32.totalorder %s32_s19, %s32_s19 }
   0x6   :  { %p768_p0 = scmp.ne.s32.totalorder %s32_s19, %s767_s22  ;;  %p773_p2 = scmp.lt.s32.totalorder %s767_s22, %s767_s22 }
   0x8   :  { %p774_p3 = por %p773_p2, %p772_p1 }
   0xa   :  { %p775_p4 = pnand %p774_p3, %p768_p0 }
   0xc   :  { %778 = shalt.err (!%p775_p4)
}
   0xd   :  { %s905_s23 = smov 128   ;;  %s906_s24 = smov 8  }
   0xe   :  { %37 = dma.hbm_to_vmem [thread:$0]  %s1079_s1, 256, %s32_s19, [#allocation11], %s905_s23, %s905_s23, %s906_s24  }
   0xf   :  { %s787_s27 = scalar_lea.vmem %s56_s21, 256  ;;  %p792_p6 = scmp.lt.s32.totalorder %s56_s21, %s56_s21 }
  0x10   :  { %p788_p5 = scmp.ne.s32.totalorder %s56_s21, %s787_s27  ;;  %p793_p7 = scmp.lt.s32.totalorder %s787_s27, %s787_s27 }
  0x12   :  { %p794_p8 = por %p793_p7, %p792_p6 }
  0x14   :  { %p795_p9 = pnand %p794_p8, %p788_p5 }
  0x16   :  { %798 = shalt.err (!%p795_p9)
}
  0x17   :  { %61 = dma.hbm_to_vmem [thread:$0]  %s1081_s3, 256, %s56_s21, [#allocation14], %s905_s23, %s905_s23, %s906_s24  }
  0x18   :  { %s907_s30 = smov [#allocation7]   ;;  %s908_s7 = smov [#allocation12]  }
  0x19   :  { %s19_s6 = sshll.u32 %s907_s30, 4  ;;  %s43_s8 = sshll.u32 %s908_s7, 4  ;;  %s20_s6 = int_to_ptr.vmem [resolvable:$true] %s19_s6  ;;  %s44_s8 = int_to_ptr.vmem [resolvable:$true] %s43_s8 }
  0x1a   :  { %s807_s1 = scalar_lea.vmem %s20_s6, 512  ;;  %p812_p11 = scmp.lt.s32.totalorder %s20_s6, %s20_s6 }
  0x1b   :  { %p808_p10 = scmp.ne.s32.totalorder %s20_s6, %s807_s1  ;;  %p813_p12 = scmp.lt.s32.totalorder %s807_s1, %s807_s1 }
  0x1d   :  { %p814_p13 = por %p813_p12, %p812_p11 }
  0x1f   :  { %p815_p0 = pnand %p814_p13, %p808_p10 }
  0x21   :  { %818 = shalt.err (!%p815_p0)
}
  0x22   :  { %25 = dma.hbm_to_vmem [thread:$0]  %s1078_s0, 512, %s20_s6, [#allocation8], %s905_s23, %s905_s23, %s906_s24  }
  0x23   :  { %s827_s3 = scalar_lea.vmem %s44_s8, 2048  ;;  %p832_p2 = scmp.lt.s32.totalorder %s44_s8, %s44_s8 }
  0x24   :  { %p828_p1 = scmp.ne.s32.totalorder %s44_s8, %s827_s3  ;;  %p833_p3 = scmp.lt.s32.totalorder %s827_s3, %s827_s3 }
  0x26   :  { %p834_p4 = por %p833_p3, %p832_p2 }
  0x28   :  { %p835_p5 = pnand %p834_p4, %p828_p1 }
  0x2a   :  { %838 = shalt.err (!%p835_p5)
}
  0x2b   :  { %49 = dma.hbm_to_vmem [thread:$0]  %s1080_s2, 2048, %s44_s8, [#allocation11], %s905_s23, %s905_s23, %s906_s24  }
  0x2c   :  { %s909_s13 = smov [#allocation15]  }
  0x2d   :  { %s67_s14 = sshll.u32 %s909_s13, 4  ;;  %s68_s14 = int_to_ptr.vmem [resolvable:$true] %s67_s14 }
  0x2e   :  { %s847_s15 = scalar_lea.vmem %s68_s14, 2048  ;;  %p852_p7 = scmp.lt.s32.totalorder %s68_s14, %s68_s14 }
  0x2f   :  { %p848_p6 = scmp.ne.s32.totalorder %s68_s14, %s847_s15  ;;  %p853_p8 = scmp.lt.s32.totalorder %s847_s15, %s847_s15 }
  0x31   :  { %p854_p9 = por %p853_p8, %p852_p7 }
  0x33   :  { %p855_p10 = pnand %p854_p9, %p848_p6 }
  0x35   :  { %858 = shalt.err (!%p855_p10)
}
  0x36   :  { %73 = dma.hbm_to_vmem [thread:$0]  %s1082_s4, 2048, %s68_s14, [#allocation14], %s905_s23, %s905_s23, %s906_s24  }
  0x37   :  { %887 = dma.done.wait [#allocation8], 512  }
  0x38   :  { %888 = vsyncadd [#allocation8], 4294966784 }
  0x39   :  { %889 = dma.done.wait [#allocation11], 2304  }
  0x3a   :  { %890 = vsyncadd [#allocation11], 4294964992 }
  0x3b   :  { %891 = dma.done.wait [#allocation14], 2304  }
  0x3c   :  { %892 = vsyncadd [#allocation14], 4294964992  ;;  %v910_v0 = vmov 0.0   ;;  %v976_v1 = vld [vmem:[#allocation10] sm:$0xff]  ;;  %v978_v2 = vld [vmem:[#allocation10 + $0x8] ss:$0 sm:$0xff] }
  0x3d   :  { %89 = vst [vmem:[#allocation2] sm:$0x1] %v910_v0  ;;  %90 = vst [vmem:[#allocation2 + $0x11] sm:$0x1] %v910_v0  ;;  %v980_v3 = vld [vmem:[#allocation13] sm:$0xff]  ;;  %s984_s2 = smov 0  }
  0x3e   :  { %91 = vst [vmem:[#allocation3] sm:$0x1] %v910_v0  ;;  %92 = vst [vmem:[#allocation3 + $0x11] sm:$0x1] %v910_v0  ;;  %v982_v4 = vld [vmem:[#allocation13 + $0x8] ss:$0 sm:$0xff] }
  0x3f LB: > { %s610_s4 = sshll.u32 %s897_s2, 4  ;;  %s911_s18 = smov 120   ;;  %v115_v11 = vlaneseq  ;;  %s897_s2 = sphi %s984_s2, %s102_s2  }
  0x40   : > { %s104_s17 = scalar_lea.vmem [#allocation7], %s610_s4  ;;  %s912_s19 = smov 8  }
  0x41   : > { %v105_v5 = vld [vmem:[%s104_s17] sm:$0xff]  ;;  %v106_v6 = vld [vmem:[%s104_s17 + $0x8] sm:$0xff]  ;;  %v992_v12 = vshrl.u32 %v115_v11, 7  ;;  %s211_s20 = scalar_lea.vmem [#allocation4], %s610_s4  ;;  %s102_s2 = sadd.s32 1, %s897_s2  }
  0x42   : > { %107 = vst [vmem:[#allocation2 + $0x1] sm:$0xff] %v105_v5  ;;  %108 = vst [vmem:[#allocation2 + $0x9] sm:$0xff] %v106_v6  ;;  %p99_p11 = scmp.ge.s32.totalorder %s102_s2, 2  }
  0x43   : > { %v125_v13 = vsub.s32 1, %v992_v12  ;;  %v117_v14 = vsub.s32 0, %v992_v12  ;;  %v137_v17 = vsub.s32 2, %v992_v12  ;;  %v159_v18 = vsub.s32 4, %v992_v12  ;;  %s1033_s21 = smov (%p99_p11), 0  }
  0x44   : > { %v151_v23 = vsub.s32 3, %v992_v12  ;;  %v171_v29 = vsub.s32 5, %v992_v12  ;;  %v193_v33 = vsub.s32 7, %v992_v12  ;;  %v185_v42 = vsub.s32 6, %v992_v12 }
  0x45   : > { %v126_v15 = vrot.slane %v976_v1, %v125_v13  ;;  %v118_v16 = vrot.slane %v976_v1, %v117_v14  ;;  %v138_v25 = vrot.slane %v976_v1, %v137_v17  ;;  %v160_v26 = vrot.slane %v976_v1, %v159_v18 }
  0x46   : > { %v152_v32 = vrot.slane %v976_v1, %v151_v23  ;;  %v172_v41 = vrot.slane %v976_v1, %v171_v29  ;;  %v194_v49 = vrot.slane %v976_v1, %v193_v33  ;;  %v186_v52 = vrot.slane %v976_v1, %v185_v42  ;;  %v222_v1 = vld [vmem:[#allocation12 + $0x40] sm:$0xff] (%p99_p11) }
  0x47   : > { %v162_v37 = vmul.f32 %v160_v26, %v106_v6  ;;  %v161_v38 = vmul.f32 %v160_v26, %v105_v5  ;;  %v225_v26 = vld [vmem:[#allocation12 + $0x58] sm:$0xff] (%p99_p11) }
  0x49   : > { %v109_v7 = vld [vmem:[#allocation2] sm:$0xff]  ;;  %v110_v8 = vld [vmem:[#allocation2 + $0x8] sm:$0xff] }
  0x4a   : > { %131 = vrot.lane.b32.xlu1 %v109_v7, %s911_s18  ;;  %111 = vrot.lane.b32.xlu0 %v109_v7, %s912_s19  ;;  %v178_v9 = vld [vmem:[#allocation2 + $0xa] sm:$0xff]  ;;  %v177_v10 = vld [vmem:[#allocation2 + $0x2] sm:$0xff]  ;;  %v127_v21 = vmul.f32 %v126_v15, %v109_v7  ;;  %v128_v24 = vmul.f32 %v126_v15, %v110_v8 }
  0x4b   : > { %v196_v57 = vmul.f32 %v194_v49, %v178_v9  ;;  %v195_v58 = vmul.f32 %v194_v49, %v177_v10 }
  0x4e   : > { %133 = vrot.lane.b32.xlu1 %v110_v8, %s911_s18  ;;  %113 = vrot.lane.b32.xlu0 %v110_v8, %s912_s19 }
  0x52   : > { %147 = vrot.lane.b32.xlu1 %v106_v6, %s912_s19  ;;  %145 = vrot.lane.b32.xlu0 %v105_v5, %s912_s19 }
  0x56   : > { %167 = vrot.lane.b32.xlu1 %v106_v6, %s911_s18  ;;  %165 = vrot.lane.b32.xlu0 %v105_v5, %s911_s18 }
  0x5a   : > { %181 = vrot.lane.b32.xlu1 %v178_v9, %s912_s19  ;;  %179 = vrot.lane.b32.xlu0 %v177_v10, %s912_s19 }
  0x5e   : > { %201 = vrot.lane.b32.xlu1 %v178_v9, %s911_s18  ;;  %199 = vrot.lane.b32.xlu0 %v177_v10, %s911_s18  ;;  %v229_v10 = vld [vmem:[#allocation12 + $0x78] sm:$0xff] (%p99_p11) }
  0x5f   :  { %654 = vmatprep.subr.mxu0 (%p99_p11), %v229_v10 }
  0x60   :  { %655 = vmatpush3.msra.mxu0 (%p99_p11), %v229_v10 }
  0xbc   : > { %v132_v19 = vpop.permute.xlu1 %131  ;;  %v112_v20 = vpop.permute.xlu0 %111 }
  0xbd   : > { %v119_v22 = vmul.f32 %v118_v16, %v112_v20  ;;  %v139_v34 = vmul.f32 %v138_v25, %v132_v19 }
  0xbf   : > { %v129_v30 = vadd.f32 %v127_v21, %v119_v22  ;;  %v228_v21 = vld [vmem:[#allocation12 + $0x70] sm:$0xff] (%p99_p11)  ;;  %v227_v22 = vld [vmem:[#allocation12 + $0x68] sm:$0xff] (%p99_p11) }
  0xc0   : > { %v134_v27 = vpop.permute.xlu1 %133  ;;  %v114_v28 = vpop.permute.xlu0 %113  ;;  %656 = vmatprep.subr.mxu0 (%p99_p11), %v228_v21 }
  0xc1   : > { %v120_v31 = vmul.f32 %v118_v16, %v114_v28  ;;  %v140_v35 = vmul.f32 %v138_v25, %v134_v27  ;;  %v141_v45 = vadd.f32 %v139_v34, %v129_v30  ;;  %657 = vmatpush3.msra.mxu0 (%p99_p11), %v228_v21  ;;  %v224_v27 = vld [vmem:[#allocation12 + $0x50] sm:$0xff] (%p99_p11)  ;;  %v223_v28 = vld [vmem:[#allocation12 + $0x48] sm:$0xff] (%p99_p11)  ;;  %v217_v34 = vld [vmem:[#allocation12 + $0x18] sm:$0xff] (%p99_p11) }
  0xc2   :  { %658 = vmatprep.subr.mxu0 (%p99_p11), %v227_v22  ;;  %v220_v30 = vld [vmem:[#allocation12 + $0x30] sm:$0xff] (%p99_p11) }
  0xc3   : > { %v130_v36 = vadd.f32 %v128_v24, %v120_v31  ;;  %v226_v24 = vld [vmem:[#allocation12 + $0x60] sm:$0xff] (%p99_p11)  ;;  %659 = vmatpush3.msra.mxu0 (%p99_p11), %v227_v22  ;;  %v219_v31 = vld [vmem:[#allocation12 + $0x28] sm:$0xff] (%p99_p11) }
  0xc4   : > { %v148_v39 = vpop.permute.xlu1 %147  ;;  %v146_v40 = vpop.permute.xlu0 %145  ;;  %660 = vmatprep.subr.mxu0 (%p99_p11), %v226_v24 }
  0xc5   : > { %v142_v43 = vadd.f32 %v140_v35, %v130_v36  ;;  %v154_v44 = vmul.f32 %v152_v32, %v148_v39  ;;  %v153_v46 = vmul.f32 %v152_v32, %v146_v40  ;;  %661 = vmatpush3.msra.mxu0 (%p99_p11), %v226_v24  ;;  %v218_v32 = vld [vmem:[#allocation12 + $0x20] sm:$0xff] (%p99_p11)  ;;  %v216_v35 = vld [vmem:[#allocation12 + $0x10] sm:$0xff] (%p99_p11)  ;;  %v215_v36 = vld [vmem:[#allocation12 + $0x8] sm:$0xff] (%p99_p11) }
  0xc6   :  { %662 = vmatprep.subr.mxu0 (%p99_p11), %v225_v26 }
  0xc7   : > { %v156_v47 = vadd.f32 %v154_v44, %v142_v43  ;;  %v155_v48 = vadd.f32 %v153_v46, %v141_v45  ;;  %663 = vmatpush3.msra.mxu0 (%p99_p11), %v225_v26 }
  0xc8   : > { %v168_v50 = vpop.permute.xlu1 %167  ;;  %v166_v51 = vpop.permute.xlu0 %165  ;;  %664 = vmatprep.subr.mxu0 (%p99_p11), %v224_v27 }
  0xc9   : > { %v164_v53 = vadd.f32 %v162_v37, %v156_v47  ;;  %v174_v54 = vmul.f32 %v172_v41, %v168_v50  ;;  %v163_v55 = vadd.f32 %v161_v38, %v155_v48  ;;  %v173_v56 = vmul.f32 %v172_v41, %v166_v51  ;;  %665 = vmatpush3.msra.mxu0 (%p99_p11), %v224_v27  ;;  %v214_v37 = vld [vmem:[#allocation12] sm:$0xff] (%p99_p11) }
  0xca   :  { %666 = vmatprep.subr.mxu0 (%p99_p11), %v223_v28 }
  0xcb   : > { %v176_v61 = vadd.f32 %v174_v54, %v164_v53  ;;  %v175_v62 = vadd.f32 %v173_v56, %v163_v55  ;;  %667 = vmatpush3.msra.mxu0 (%p99_p11), %v223_v28 }
  0xcc   : > { %v182_v59 = vpop.permute.xlu1 %181  ;;  %v180_v60 = vpop.permute.xlu0 %179  ;;  %668 = vmatprep.subr.mxu0 (%p99_p11), %v222_v1 }
  0xcd   : > { %v188_v63 = vmul.f32 %v186_v52, %v182_v59  ;;  %v187_v0 = vmul.f32 %v186_v52, %v180_v60  ;;  %669 = vmatpush3.msra.mxu0 (%p99_p11), %v222_v1 }
  0xcf   : > { %v190_v5 = vadd.f32 %v188_v63, %v176_v61  ;;  %v189_v6 = vadd.f32 %v187_v0, %v175_v62 }
  0xd0   : > { %v202_v7 = vpop.permute.xlu1 %201  ;;  %v200_v8 = vpop.permute.xlu0 %199 }
  0xd1   : > { %v198_v11 = vadd.f32 %v196_v57, %v190_v5  ;;  %v208_v15 = vmul.f32 %v978_v2, %v202_v7  ;;  %v197_v16 = vadd.f32 %v195_v58, %v189_v6  ;;  %v207_v19 = vmul.f32 %v978_v2, %v200_v8  ;;  %101 = sbr.rel (!%p99_p11) target bundleno = 63 (0x3f), region = 78  ;;  %v221_v2 = vld [vmem:[#allocation12 + $0x38] sm:$0xff] (%p99_p11) }
  0xd2   :  { %670 = vmatprep.subr.mxu0 (%p99_p11), %v221_v2 }
  0xd3   : > { %v210_v20 = vadd.f32 %v208_v15, %v198_v11  ;;  %v209_v9 = vadd.f32 %v207_v19, %v197_v16  ;;  %671 = vmatpush3.msra.mxu0 (%p99_p11), %v221_v2 }
  0xd4   :  { %672 = vmatprep.subr.mxu0 (%p99_p11), %v220_v30 }
  0xd5   : > { %213 = vst [vmem:[%s211_s20 + $0x8] sm:$0xff] %v210_v20  ;;  %212 = vst [vmem:[%s211_s20] sm:$0xff] %v209_v9  ;;  %673 = vmatpush3.msra.mxu0 (%p99_p11), %v220_v30 }
  0xd6   :  { %674 = vmatprep.subr.mxu0 %v219_v31 }
  0xd7   :  { %675 = vmatpush3.msra.mxu0 %v219_v31 }
  0xd8   :  { %676 = vmatprep.subr.mxu0 %v218_v32 }
  0xd9   :  { %677 = vmatpush3.msra.mxu0 %v218_v32 }
  0xda   :  { %678 = vmatprep.subr.mxu0 %v217_v34 }
  0xdb   :  { %679 = vmatpush3.msra.mxu0 %v217_v34 }
  0xdc   :  { %v230_v25 = vld [vmem:[#allocation4] sm:$0xff]  ;;  %680 = vmatprep.subr.mxu0 %v216_v35  ;;  %v231_v38 = vld [vmem:[#allocation4 + $0x8] sm:$0xff]  ;;  %v232_v39 = vld [vmem:[#allocation4 + $0x10] sm:$0xff] }
  0xdd   :  { %686 = vmatprep.mubr.f32.mxu0 %v230_v25  ;;  %681 = vmatpush3.msra.mxu0 %v216_v35  ;;  %v233_v40 = vld [vmem:[#allocation4 + $0x18] sm:$0xff] }
  0xde   :  { %682 = vmatprep.subr.mxu0 %v215_v36 }
  0xdf   :  { %683 = vmatpush3.msra.mxu0 %v215_v36 }
  0xe0   :  { %684 = vmatprep.subr.mxu0 %v214_v37 }
  0xe1   :  { %685 = vmatpush3.msra.mxu0 %v214_v37 }
  0xe2   :  { %687 = vmatmul.mubr.f32.vlgmr.msra.gmra.mxu0 %v231_v38 }
  0xe3   :  { %689 = vmatprep.mubr.f32.mxu0 %v232_v39 }
  0xe6   :  { %690 = vmatmul.mubr.f32.gmra.mxu0 %v233_v40 }
 0x1a2   :  { %v688_v41 = vpop.f32.mrf.mxu0 }
 0x1a3   :  { %v320_v43 = vmul.f32 0.01, %v688_v41 }
 0x1a4   :  { %v300_v44 = vpop.f32.mrf.mxu0 }
 0x1a5   :  { %v324_v45 = vmax.f32 %v688_v41, %v320_v43  ;;  %v319_v46 = vmul.f32 0.01, %v300_v44 }
 0x1a6   :  { %v691_v47 = vpop.f32.mrf.mxu0 }
 0x1a7   :  { %328 = vst [vmem:[#allocation5 + $0x8] sm:$0xff] %v324_v45  ;;  %v323_v48 = vmax.f32 %v300_v44, %v319_v46  ;;  %v322_v49 = vmul.f32 0.01, %v691_v47 }
 0x1a8   :  { %v310_v50 = vpop.f32.mrf.mxu0 }
 0x1a9   :  { %327 = vst [vmem:[#allocation5] sm:$0xff] %v323_v48  ;;  %v326_v51 = vmax.f32 %v691_v47, %v322_v49  ;;  %v321_v52 = vmul.f32 0.01, %v310_v50 }
 0x1ab   :  { %330 = vst [vmem:[#allocation5 + $0x18] sm:$0xff] %v326_v51  ;;  %v325_v53 = vmax.f32 %v310_v50, %v321_v52 }
 0x1ad   :  { %329 = vst [vmem:[#allocation5 + $0x10] sm:$0xff] %v325_v53 }
 0x1ae LB: > { %s612_s22 = sshll.u32 %s901_s21, 4  ;;  %s913_s26 = smov 120   ;;  %v360_v60 = vrot.slane %v980_v3, %v125_v13  ;;  %v352_v61 = vrot.slane %v980_v3, %v117_v14  ;;  %v372_v7 = vrot.slane %v980_v3, %v137_v17  ;;  %v394_v8 = vrot.slane %v980_v3, %v159_v18  ;;  %s901_s21 = sphi %s1033_s21, %s336_s21  }
 0x1af   : > { %s338_s25 = scalar_lea.vmem [#allocation5], %s612_s22  ;;  %s914_s27 = smov 8   ;;  %v386_v20 = vrot.slane %v980_v3, %v151_v23  ;;  %v406_v27 = vrot.slane %v980_v3, %v171_v29  ;;  %v428_v34 = vrot.slane %v980_v3, %v193_v33  ;;  %v420_v37 = vrot.slane %v980_v3, %v185_v42 }
 0x1b0   : > { %s445_s28 = scalar_lea.vmem [#allocation6], %s612_s22  ;;  %s336_s21 = sadd.s32 1, %s901_s21  }
 0x1b1   : > { %p333_p12 = scmp.ge.s32.totalorder %s336_s21, 2  }
 0x1b2   :  { %v456_v3 = vld [vmem:[#allocation15 + $0x40] sm:$0xff] (%p333_p12)  ;;  %v454_v12 = vld [vmem:[#allocation15 + $0x30] sm:$0xff] (%p333_p12)  ;;  %v453_v13 = vld [vmem:[#allocation15 + $0x28] sm:$0xff] (%p333_p12)  ;;  %s915_s29 = smov (%p333_p12), [#allocation16]  }
 0x1b3   :  { %v452_v14 = vld [vmem:[#allocation15 + $0x20] sm:$0xff] (%p333_p12)  ;;  %v451_v17 = vld [vmem:[#allocation15 + $0x18] sm:$0xff] (%p333_p12)  ;;  %v450_v18 = vld [vmem:[#allocation15 + $0x10] sm:$0xff] (%p333_p12)  ;;  %s578_s30 = sshll.u32 (%p333_p12), %s915_s29, 4  ;;  %s579_s30 = int_to_ptr.vmem [resolvable:$true] %s578_s30 }
 0x1b4   : > { %v339_v54 = vld [vmem:[%s338_s25] sm:$0xff]  ;;  %v340_v55 = vld [vmem:[%s338_s25 + $0x8] sm:$0xff]  ;;  %v449_v23 = vld [vmem:[#allocation15 + $0x8] sm:$0xff] (%p333_p12)  ;;  %s859_s6 = scalar_lea.vmem (%p333_p12), %s579_s30, 512  ;;  %p864_p0 = scmp.lt.s32.totalorder (%p333_p12), %s579_s30, %s579_s30 }
 0x1b5   : > { %341 = vst [vmem:[#allocation3 + $0x1] sm:$0xff] %v339_v54  ;;  %342 = vst [vmem:[#allocation3 + $0x9] sm:$0xff] %v340_v55  ;;  %v396_v22 = vmul.f32 %v394_v8, %v340_v55  ;;  %v395_v24 = vmul.f32 %v394_v8, %v339_v54  ;;  %v457_v8 = vld [vmem:[#allocation15 + $0x48] sm:$0xff] (%p333_p12)  ;;  %v448_v29 = vld [vmem:[#allocation15] sm:$0xff] (%p333_p12)  ;;  %p860_p13 = scmp.ne.s32.totalorder (%p333_p12), %s579_s30, %s859_s6  ;;  %p865_p1 = scmp.lt.s32.totalorder (%p333_p12), %s859_s6, %s859_s6 }
 0x1b7   :  { %p866_p2 = por (%p333_p12), %p865_p1, %p864_p0 }
 0x1b9   :  { %p867_p3 = pnand (%p333_p12), %p866_p2, %p860_p13 }
 0x1bc   : > { %v343_v56 = vld [vmem:[#allocation3] sm:$0xff]  ;;  %v344_v57 = vld [vmem:[#allocation3 + $0x8] sm:$0xff] }
 0x1bd   : > { %365 = vrot.lane.b32.xlu1 %v343_v56, %s913_s26  ;;  %345 = vrot.lane.b32.xlu0 %v343_v56, %s914_s27  ;;  %v412_v58 = vld [vmem:[#allocation3 + $0xa] sm:$0xff]  ;;  %v411_v59 = vld [vmem:[#allocation3 + $0x2] sm:$0xff]  ;;  %v361_v0 = vmul.f32 %v360_v60, %v343_v56  ;;  %v362_v6 = vmul.f32 %v360_v60, %v344_v57 }
 0x1be   : > { %v430_v43 = vmul.f32 %v428_v34, %v412_v58  ;;  %v429_v44 = vmul.f32 %v428_v34, %v411_v59 }
 0x1c1   : > { %367 = vrot.lane.b32.xlu1 %v344_v57, %s913_s26  ;;  %347 = vrot.lane.b32.xlu0 %v344_v57, %s914_s27 }
 0x1c5   : > { %381 = vrot.lane.b32.xlu1 %v340_v55, %s914_s27  ;;  %379 = vrot.lane.b32.xlu0 %v339_v54, %s914_s27 }
 0x1c9   : > { %401 = vrot.lane.b32.xlu1 %v340_v55, %s913_s26  ;;  %399 = vrot.lane.b32.xlu0 %v339_v54, %s913_s26 }
 0x1cd   : > { %415 = vrot.lane.b32.xlu1 %v412_v58, %s914_s27  ;;  %413 = vrot.lane.b32.xlu0 %v411_v59, %s914_s27 }
 0x1d1   : > { %435 = vrot.lane.b32.xlu1 %v412_v58, %s913_s26  ;;  %433 = vrot.lane.b32.xlu0 %v411_v59, %s913_s26  ;;  %v463_v59 = vld [vmem:[#allocation15 + $0x78] sm:$0xff] (%p333_p12) }
 0x1d2   :  { %692 = vmatprep.subr.mxu1 (%p333_p12), %v463_v59 }
 0x1d3   :  { %693 = vmatpush3.msra.mxu1 (%p333_p12), %v463_v59 }
 0x22f   : > { %v366_v62 = vpop.permute.xlu1 %365  ;;  %v346_v63 = vpop.permute.xlu0 %345 }
 0x230   : > { %v353_v5 = vmul.f32 %v352_v61, %v346_v63  ;;  %v373_v9 = vmul.f32 %v372_v7, %v366_v62  ;;  %v462_v62 = vld [vmem:[#allocation15 + $0x70] sm:$0xff] (%p333_p12)  ;;  %v461_v63 = vld [vmem:[#allocation15 + $0x68] sm:$0xff] (%p333_p12) }
 0x231   :  { %694 = vmatprep.subr.mxu1 (%p333_p12), %v462_v62 }
 0x232   : > { %v363_v16 = vadd.f32 %v361_v0, %v353_v5  ;;  %695 = vmatpush3.msra.mxu1 (%p333_p12), %v462_v62  ;;  %v460_v0 = vld [vmem:[#allocation15 + $0x60] sm:$0xff] (%p333_p12) }
 0x233   : > { %v368_v11 = vpop.permute.xlu1 %367  ;;  %v348_v15 = vpop.permute.xlu0 %347  ;;  %696 = vmatprep.subr.mxu1 (%p333_p12), %v461_v63 }
 0x234   : > { %v354_v19 = vmul.f32 %v352_v61, %v348_v15  ;;  %v374_v10 = vmul.f32 %v372_v7, %v368_v11  ;;  %v375_v2 = vadd.f32 %v373_v9, %v363_v16  ;;  %697 = vmatpush3.msra.mxu1 (%p333_p12), %v461_v63  ;;  %v458_v7 = vld [vmem:[#allocation15 + $0x50] sm:$0xff] (%p333_p12)  ;;  %v554_v15 = vld [vmem:[#allocation7 + $0x8] sm:$0xff] (%p333_p12) }
 0x235   :  { %698 = vmatprep.subr.mxu1 (%p333_p12), %v460_v0 }
 0x236   : > { %v364_v21 = vadd.f32 %v362_v6, %v354_v19  ;;  %v459_v6 = vld [vmem:[#allocation15 + $0x58] sm:$0xff] (%p333_p12)  ;;  %699 = vmatpush3.msra.mxu1 (%p333_p12), %v460_v0  ;;  %v553_v19 = vld [vmem:[#allocation7] sm:$0xff] (%p333_p12) }
 0x237   : > { %v382_v25 = vpop.permute.xlu1 %381  ;;  %v380_v26 = vpop.permute.xlu0 %379  ;;  %700 = vmatprep.subr.mxu1 (%p333_p12), %v459_v6 }
 0x238   : > { %v376_v28 = vadd.f32 %v374_v10, %v364_v21  ;;  %v388_v1 = vmul.f32 %v386_v20, %v382_v25  ;;  %v387_v30 = vmul.f32 %v386_v20, %v380_v26  ;;  %701 = vmatpush3.msra.mxu1 (%p333_p12), %v459_v6  ;;  %v556_v10 = vld [vmem:[#allocation7 + $0x18] sm:$0xff] (%p333_p12)  ;;  %v555_v25 = vld [vmem:[#allocation7 + $0x10] sm:$0xff] (%p333_p12) }
 0x239   :  { %702 = vmatprep.subr.mxu1 (%p333_p12), %v458_v7 }
 0x23a   : > { %v390_v31 = vadd.f32 %v388_v1, %v376_v28  ;;  %v389_v32 = vadd.f32 %v387_v30, %v375_v2  ;;  %703 = vmatpush3.msra.mxu1 (%p333_p12), %v458_v7 }
 0x23b   : > { %v402_v35 = vpop.permute.xlu1 %401  ;;  %v400_v36 = vpop.permute.xlu0 %399  ;;  %704 = vmatprep.subr.mxu1 (%p333_p12), %v457_v8 }
 0x23c   : > { %v398_v38 = vadd.f32 %v396_v22, %v390_v31  ;;  %v408_v39 = vmul.f32 %v406_v27, %v402_v35  ;;  %v397_v40 = vadd.f32 %v395_v24, %v389_v32  ;;  %v407_v41 = vmul.f32 %v406_v27, %v400_v36  ;;  %705 = vmatpush3.msra.mxu1 (%p333_p12), %v457_v8 }
 0x23d   :  { %706 = vmatprep.subr.mxu1 (%p333_p12), %v456_v3 }
 0x23e   : > { %v410_v47 = vadd.f32 %v408_v39, %v398_v38  ;;  %v409_v48 = vadd.f32 %v407_v41, %v397_v40  ;;  %707 = vmatpush3.msra.mxu1 (%p333_p12), %v456_v3 }
 0x23f   : > { %v416_v45 = vpop.permute.xlu1 %415  ;;  %v414_v46 = vpop.permute.xlu0 %413 }
 0x240   : > { %v422_v49 = vmul.f32 %v420_v37, %v416_v45  ;;  %v421_v50 = vmul.f32 %v420_v37, %v414_v46 }
 0x242   : > { %v424_v51 = vadd.f32 %v422_v49, %v410_v47  ;;  %v423_v52 = vadd.f32 %v421_v50, %v409_v48 }
 0x243   : > { %v436_v53 = vpop.permute.xlu1 %435  ;;  %v434_v54 = vpop.permute.xlu0 %433 }
 0x244   : > { %v432_v55 = vadd.f32 %v430_v43, %v424_v51  ;;  %v442_v56 = vmul.f32 %v982_v4, %v436_v53  ;;  %v431_v57 = vadd.f32 %v429_v44, %v423_v52  ;;  %v441_v60 = vmul.f32 %v982_v4, %v434_v54  ;;  %335 = sbr.rel (!%p333_p12) target bundleno = 430 (0x1ae), region = 89  ;;  %v455_v4 = vld [vmem:[#allocation15 + $0x38] sm:$0xff] (%p333_p12) }
 0x245   :  { %708 = vmatprep.subr.mxu1 (%p333_p12), %v455_v4 }
 0x246   : > { %v444_v61 = vadd.f32 %v442_v56, %v432_v55  ;;  %v443_v58 = vadd.f32 %v441_v60, %v431_v57  ;;  %709 = vmatpush3.msra.mxu1 (%p333_p12), %v455_v4 }
 0x247   :  { %710 = vmatprep.subr.mxu1 (%p333_p12), %v454_v12 }
 0x248   : > { %447 = vst [vmem:[%s445_s28 + $0x8] sm:$0xff] %v444_v61  ;;  %446 = vst [vmem:[%s445_s28] sm:$0xff] %v443_v58  ;;  %711 = vmatpush3.msra.mxu1 (%p333_p12), %v454_v12 }
 0x249   :  { %712 = vmatprep.subr.mxu1 %v453_v13 }
 0x24a   :  { %713 = vmatpush3.msra.mxu1 %v453_v13 }
 0x24b   :  { %714 = vmatprep.subr.mxu1 %v452_v14 }
 0x24c   :  { %715 = vmatpush3.msra.mxu1 %v452_v14 }
 0x24d   :  { %716 = vmatprep.subr.mxu1 %v451_v17 }
 0x24e   :  { %717 = vmatpush3.msra.mxu1 %v451_v17 }
 0x24f   :  { %v464_v5 = vld [vmem:[#allocation6] sm:$0xff]  ;;  %718 = vmatprep.subr.mxu1 %v450_v18  ;;  %v465_v33 = vld [vmem:[#allocation6 + $0x8] sm:$0xff]  ;;  %v466_v42 = vld [vmem:[#allocation6 + $0x10] sm:$0xff] }
 0x250   :  { %724 = vmatprep.mubr.f32.mxu1 %v464_v5  ;;  %719 = vmatpush3.msra.mxu1 %v450_v18  ;;  %v467_v11 = vld [vmem:[#allocation6 + $0x18] sm:$0xff] }
 0x251   :  { %720 = vmatprep.subr.mxu1 %v449_v23 }
 0x252   :  { %721 = vmatpush3.msra.mxu1 %v449_v23 }
 0x253   :  { %722 = vmatprep.subr.mxu1 %v448_v29 }
 0x254   :  { %723 = vmatpush3.msra.mxu1 %v448_v29 }
 0x255   :  { %725 = vmatmul.mubr.f32.vlgmr.msra.gmra.mxu1 %v465_v33 }
 0x256   :  { %727 = vmatprep.mubr.f32.mxu1 %v466_v42 }
 0x259   :  { %728 = vmatmul.mubr.f32.gmra.mxu1 %v467_v11 }
 0x315   :  { %v726_v16 = vpop.f32.mrf.mxu1 }
 0x316   :  { %v558_v20 = vadd.f32 %v726_v16, %v554_v15 }
 0x317   :  { %v534_v9 = vpop.f32.mrf.mxu1 }
 0x318   :  { %v562_v21 = vmul.f32 0.01, %v558_v20  ;;  %v557_v22 = vadd.f32 %v553_v19, %v534_v9 }
 0x319   :  { %v729_v24 = vpop.f32.mrf.mxu1 }
 0x31a   :  { %v566_v26 = vmax.f32 %v558_v20, %v562_v21  ;;  %v561_v27 = vmul.f32 0.01, %v557_v22  ;;  %v560_v28 = vadd.f32 %v729_v24, %v556_v10 }
 0x31b   :  { %v544_v1 = vpop.f32.mrf.mxu1 }
 0x31c   :  { %570 = vst [vmem:[#allocation16 + $0x8] sm:$0xff] %v566_v26  ;;  %v565_v2 = vmax.f32 %v557_v22, %v561_v27  ;;  %v564_v30 = vmul.f32 0.01, %v560_v28  ;;  %v559_v31 = vadd.f32 %v555_v25, %v544_v1 }
 0x31e   :  { %569 = vst [vmem:[#allocation16] sm:$0xff] %v565_v2  ;;  %v568_v32 = vmax.f32 %v560_v28, %v564_v30  ;;  %v563_v34 = vmul.f32 0.01, %v559_v31 }
 0x320   :  { %572 = vst [vmem:[#allocation16 + $0x18] sm:$0xff] %v568_v32  ;;  %v567_v35 = vmax.f32 %v559_v31, %v563_v34 }
 0x322   :  { %571 = vst [vmem:[#allocation16 + $0x10] sm:$0xff] %v567_v35 }
 0x323   :  { %870 = shalt.err (!%p867_p3)
}
 0x324   :  { %584 = dma.vmem_to_hbm [thread:$0]  %s579_s30, 512, %s1083_s5, [#allocation9], %s905_s23, %s905_s23, %s906_s24  }
 0x325   :  { %893 = dma.done.wait [#allocation9], 512  }
 0x326   :  { %894 = vsyncadd [#allocation9], 4294966784 }
 0x327   :  { %588 = vsyncpa [#allocation8], 1 }
 0x328   :  { %589 = vsyncpa [#allocation11], 1 }
 0x329   :  { %590 = vsyncpa [#allocation14], 1 }
 0x32a   :  { %591 = vsyncpa [#allocation9], 1 }

</bundles_post_ra>
